<compile_context>
chip_gen: v7x
topology: tpu7x:2x2x1
jax: 0.10.0
libtpu: 0.0.40
codegen_flags: <defaults>
</compile_context>

<pallas_src>
import functools

import jax
import jax.numpy as jnp
from jax import lax
from jax.experimental import pallas as pl
from jax.experimental.pallas import tpu as pltpu


# PyTorch LSTMCell gate row order is [i, f, g, o]; the kernel's column order is
# [i, f, o, g] so that all sigmoid gates are contiguous (one wide EUP slice).
_GATE_ORDER = (0, 1, 3, 2)


def _bilstm_kernel(*refs, T, B, H, has_init):
    """Fused BiLSTM: prologue GEMM for all input projections + serial recurrence.

    refs (in order):
      x_ref   : (T*B, 2H) bf16  time-major, row block t = [x_t | x_{T-1-t}]
      win_ref : (2H, 8H)  bf16  block-diag input weights, cols [i|f|o|g], fwd|rev per gate
      whh_ref : (2H, 8H)  bf16  block-diag recurrent weights, same column layout
      b_ref   : (1, 8H)   f32   b_ih + b_hh per direction, same column layout
      [h0_ref, c0_ref : (B, 2H) f32  [fwd|rev] initial state -- only if has_init]
      out_ref : (B, 2H)         final [h_fwd | h_rev]
      p_ref   : (T*B, 8H) f32   VMEM scratch: input projections, all steps/both dirs
    """
    if has_init:
        x_ref, win_ref, whh_ref, b_ref, h0_ref, c0_ref, out_ref, p_ref = refs
    else:
        x_ref, win_ref, whh_ref, b_ref, out_ref, p_ref = refs

    # ---- Phase 1 (parallel): one MXU GEMM for every time step and both directions.
    p_ref[...] = (
        jnp.dot(x_ref[...], win_ref[...], preferred_element_type=jnp.float32)
        + b_ref[...]
    )

    whh = whh_ref[...]  # loop-invariant load (bf16)

    if has_init:
        h0 = h0_ref[...].astype(jnp.float32)
        c0 = c0_ref[...].astype(jnp.float32)
    else:
        h0 = jnp.zeros((B, 2 * H), jnp.float32)
        c0 = jnp.zeros((B, 2 * H), jnp.float32)

    # ---- Phase 2 (serial): both LSTM directions advanced together each step.
    def step(t, carry):
        h_cat, c_cat = carry                               # (B, 2H) f32 each
        p_t = p_ref[pl.ds(t * B, B), :]                    # (B, 8H), time-aligned for both dirs
        gates = p_t + jnp.dot(h_cat.astype(jnp.bfloat16), whh,
                              preferred_element_type=jnp.float32)   # one MXU op / step
        sg = jax.nn.sigmoid(gates[:, : 6 * H])             # i | f | o  (both dirs, one wide op)
        g_cat = jnp.tanh(gates[:, 6 * H:])                 # g          (both dirs)
        i_cat = sg[:, : 2 * H]
        f_cat = sg[:, 2 * H: 4 * H]
        o_cat = sg[:, 4 * H: 6 * H]
        c_new = f_cat * c_cat + i_cat * g_cat
        h_new = o_cat * jnp.tanh(c_new)
        return h_new, c_new

    # Full unroll for short sequences; partial unroll caps vreg pressure at large T.
    unroll = True if T <= 32 else 8
    h_cat, _ = lax.fori_loop(0, T, step, (h0, c0), unroll=unroll)
    out_ref[...] = h_cat.astype(out_ref.dtype)


def _prep_weights(params_f, params_r, H):
    """Build block-diagonal [fwd|rev] weight matrices with [i|f|o|g] gate-major columns."""
    w_ih_f, w_hh_f, b_ih_f, b_hh_f = params_f
    w_ih_r, w_hh_r, b_ih_r, b_hh_r = params_r

    def block_diag(wf, wr):  # (4H, H) x2 -> (2H, 8H); zeros off the direction blocks
        out = jnp.zeros((2 * H, 8 * H), jnp.float32)
        for k, g in enumerate(_GATE_ORDER):
            out = out.at[:H, k * 2 * H: k * 2 * H + H].set(wf[g * H:(g + 1) * H, :].T)
            out = out.at[H:, k * 2 * H + H: (k + 1) * 2 * H].set(wr[g * H:(g + 1) * H, :].T)
        return out

    w_in_blk = block_diag(w_ih_f, w_ih_r)
    w_hh_blk = block_diag(w_hh_f, w_hh_r)
    bf, br = b_ih_f + b_hh_f, b_ih_r + b_hh_r
    b_blk = jnp.concatenate(
        [seg for g in _GATE_ORDER
         for seg in (bf[g * H:(g + 1) * H], br[g * H:(g + 1) * H])]
    ).reshape(1, 8 * H)
    return (w_in_blk.astype(jnp.bfloat16),
            w_hh_blk.astype(jnp.bfloat16),
            b_blk.astype(jnp.float32))


def bilstm_forward(x, params_f, params_r, h0=None, c0=None):
    """x: (B, T, H). params_*: (w_ih (4H,H), w_hh (4H,H), b_ih (4H,), b_hh (4H,)).

    Returns (h_forward_final, h_reverse_final), matching BiLSTMClass.forward.
    """
    B, T, H = x.shape
    dtype = x.dtype
    if T == 0:  # the reference loops never run -> return the initial hidden state
        h_init = jnp.zeros((B, H), dtype) if h0 is None else h0
        return h_init, h_init

    w_in_blk, w_hh_blk, b_blk = _prep_weights(params_f, params_r, H)

    # Pad batch to a multiple of 8 sublanes; padded rows are independent and sliced off.
    B_pad = ((B + 7) // 8) * 8
    pad = B_pad - B
    x_p = jnp.pad(x, ((0, pad), (0, 0), (0, 0))) if pad else x

    # Time-major x with the reverse direction's input pre-folded in:
    # x_cat row block t = [x_t | x_{T-1-t}]  -> the prologue GEMM emits a projection
    # slab that is already time-aligned for BOTH directions (no reversed copy of P).
    x_tm = jnp.transpose(x_p, (1, 0, 2))                              # (T, B_pad, H)
    x_cat = jnp.concatenate([x_tm, x_tm[::-1]], axis=-1)              # (T, B_pad, 2H)
    x_cat = x_cat.reshape(T * B_pad, 2 * H).astype(jnp.bfloat16)

    has_init = (h0 is not None) or (c0 is not None)
    inputs = [x_cat, w_in_blk, w_hh_blk, b_blk]
    if has_init:
        h0_ = jnp.zeros((B, H), dtype) if h0 is None else h0
        c0_ = jnp.zeros((B, H), dtype) if c0 is None else c0
        h0_p = jnp.pad(h0_, ((0, pad), (0, 0))) if pad else h0_
        c0_p = jnp.pad(c0_, ((0, pad), (0, 0))) if pad else c0_
        inputs += [jnp.concatenate([h0_p, h0_p], axis=-1).astype(jnp.float32),
                   jnp.concatenate([c0_p, c0_p], axis=-1).astype(jnp.float32)]

    kernel = functools.partial(_bilstm_kernel, T=T, B=B_pad, H=H, has_init=has_init)
    h_cat = pl.pallas_call(
        kernel,
        out_shape=jax.ShapeDtypeStruct((B_pad, 2 * H), dtype),
        scratch_shapes=[pltpu.VMEM((T * B_pad, 8 * H), jnp.float32)],
    )(*inputs)

    return h_cat[:B, :H], h_cat[:B, H:]


# ---------------------------- pure-JAX reference -------------------------------
def bilstm_reference(x, params_f, params_r, h0=None, c0=None):
    B, T, H = x.shape
    h0 = jnp.zeros((B, H), x.dtype) if h0 is None else h0
    c0 = jnp.zeros((B, H), x.dtype) if c0 is None else c0

    def cell(x_t, h, c, p):
        w_ih, w_hh, b_ih, b_hh = p
        gates = x_t @ w_ih.T + b_ih + h @ w_hh.T + b_hh
        i, f, g, o = jnp.split(gates, 4, axis=-1)
        c_new = jax.nn.sigmoid(f) * c + jax.nn.sigmoid(i) * jnp.tanh(g)
        h_new = jax.nn.sigmoid(o) * jnp.tanh(c_new)
        return h_new, c_new

    hf, cf = h0, c0
    for t in range(T):
        hf, cf = cell(x[:, t], hf, cf, params_f)
    hr, cr = h0, c0
    for t in reversed(range(T)):
        hr, cr = cell(x[:, t], hr, cr, params_r)
    return hf, hr


if __name__ == "__main__":
    B, T, H = 4, 8, 32   # batch, seq, hidden (module implies hidden == x.size(-1))

    key = jax.random.PRNGKey(0)
    kx, *pkeys = jax.random.split(key, 9)
    scale = 1.0 / jnp.sqrt(jnp.float32(H))

    def uni(k, shape):
        return jax.random.uniform(k, shape, jnp.float32, -scale, scale)

    x = jax.random.normal(kx, (B, T, H), dtype=jnp.float32)
    # nn.LSTMCell parameters: weight_ih (4H, H), weight_hh (4H, H), bias_ih/hh (4H,)
    params_f = (uni(pkeys[0], (4 * H, H)), uni(pkeys[1], (4 * H, H)),
                uni(pkeys[2], (4 * H,)), uni(pkeys[3], (4 * H,)))
    params_r = (uni(pkeys[4], (4 * H, H)), uni(pkeys[5], (4 * H, H)),
                uni(pkeys[6], (4 * H,)), uni(pkeys[7], (4 * H,)))

    hf, hr = bilstm_forward(x, params_f, params_r)
    hf, hr = jax.block_until_ready((hf, hr))

    # f32 reference at full matmul precision (the kernel uses native bf16 MXU inputs
    # with f32 accumulation, so compare at bf16-level tolerance).
    with jax.default_matmul_precision("highest"):
        hf_ref, hr_ref = bilstm_reference(x, params_f, params_r)
    hf_ref, hr_ref = jax.block_until_ready((hf_ref, hr_ref))

    assert hf.shape == (B, H) and hr.shape == (B, H)
    assert jnp.allclose(hf, hf_ref, atol=2e-2, rtol=2e-2), "forward hidden mismatch"
    assert jnp.allclose(hr, hr_ref, atol=2e-2, rtol=2e-2), "reverse hidden mismatch"

    print("KERNEL_OK")
</pallas_src>

<mosaic_0001>
module attributes {stable_mosaic.version = 11 : i64} {
  func.func @_bilstm_kernel(%arg0: memref<64x64xbf16, #tpu.memory_space<vmem>>, %arg1: memref<64x256xbf16, #tpu.memory_space<vmem>>, %arg2: memref<64x256xbf16, #tpu.memory_space<vmem>>, %arg3: memref<1x256xf32, #tpu.memory_space<vmem>>, %arg4: memref<8x64xf32, #tpu.memory_space<vmem>>, %arg5: memref<64x256xf32, #tpu.memory_space<vmem>>) attributes {dimension_semantics = [], scalar_prefetch = 0 : i64, scratch_operands = 1 : i64, tpu.core_type = #tpu.core_type<tc>} {
    %c0 = arith.constant 0 : index
    %c0_0 = arith.constant 0 : index
    %0 = vector.load %arg0[%c0, %c0_0] : memref<64x64xbf16, #tpu.memory_space<vmem>>, vector<64x64xbf16>
    %c0_1 = arith.constant 0 : index
    %c0_2 = arith.constant 0 : index
    %1 = vector.load %arg1[%c0_1, %c0_2] : memref<64x256xbf16, #tpu.memory_space<vmem>>, vector<64x256xbf16>
    %cst = arith.constant dense<0.000000e+00> : vector<64x256xf32>
    %2 = tpu.matmul %0, %1, %cst {dimension_numbers = #tpu.dot_dimension_numbers<[1], [0], [0], [1], [0, 0, 1, 1], [], []>} : vector<64x64xbf16>, vector<64x256xbf16>, vector<64x256xf32> -> vector<64x256xf32>
    %c0_3 = arith.constant 0 : index
    %c0_4 = arith.constant 0 : index
    %3 = vector.load %arg3[%c0_3, %c0_4] : memref<1x256xf32, #tpu.memory_space<vmem>>, vector<1x256xf32>
    %4 = vector.broadcast %3 : vector<1x256xf32> to vector<64x256xf32>
    %5 = arith.addf %2, %4 : vector<64x256xf32>
    %c0_5 = arith.constant 0 : index
    %c0_6 = arith.constant 0 : index
    %6 = vector.load %arg5[%c0_5, %c0_6] : memref<64x256xf32, #tpu.memory_space<vmem>>, vector<64x256xf32>
    tpu.vector_store %arg5[%c0_5, %c0_6], %5 {strides = array<i32>} : memref<64x256xf32, #tpu.memory_space<vmem>>, vector<64x256xf32>,
    %c0_7 = arith.constant 0 : index
    %c0_8 = arith.constant 0 : index
    %7 = vector.load %arg2[%c0_7, %c0_8] : memref<64x256xbf16, #tpu.memory_space<vmem>>, vector<64x256xbf16>
    %cst_9 = arith.constant 0.000000e+00 : f32
    %8 = vector.broadcast %cst_9 : f32 to vector<8x64xf32>
    %cst_10 = arith.constant 0.000000e+00 : f32
    %9 = vector.broadcast %cst_10 : f32 to vector<8x64xf32>
    %c0_i32 = arith.constant 0 : i32
    %c8_i32 = arith.constant 8 : i32
    %10 = arith.muli %c0_i32, %c8_i32 : i32
    %11 = arith.index_cast %10 : i32 to index
    %c0_11 = arith.constant 0 : index
    %12 = vector.load %arg5[%11, %c0_11] : memref<64x256xf32, #tpu.memory_space<vmem>>, vector<8x256xf32>
    %13 = arith.truncf %8 : vector<8x64xf32> to vector<8x64xbf16>
    %cst_12 = arith.constant dense<0.000000e+00> : vector<8x256xf32>
    %14 = tpu.matmul %13, %7, %cst_12 {dimension_numbers = #tpu.dot_dimension_numbers<[1], [0], [0], [1], [0, 0, 1, 1], [], []>} : vector<8x64xbf16>, vector<64x256xbf16>, vector<8x256xf32> -> vector<8x256xf32>
    %15 = arith.addf %12, %14 : vector<8x256xf32>
    %16 = vector.extract_strided_slice %15 {offsets = [0, 0], sizes = [8, 192], strides = [1, 1]} : vector<8x256xf32> to vector<8x192xf32>
    %17 = arith.negf %16 : vector<8x192xf32>
    %18 = math.exp %17 : vector<8x192xf32>
    %cst_13 = arith.constant 1.000000e+00 : f32
    %19 = vector.broadcast %cst_13 : f32 to vector<8x192xf32>
    %20 = arith.addf %19, %18 : vector<8x192xf32>
    %21 = arith.divf %19, %20 : vector<8x192xf32>
    %22 = vector.extract_strided_slice %15 {offsets = [0, 192], sizes = [8, 64], strides = [1, 1]} : vector<8x256xf32> to vector<8x64xf32>
    %23 = math.tanh %22 : vector<8x64xf32>
    %24 = vector.extract_strided_slice %21 {offsets = [0, 0], sizes = [8, 64], strides = [1, 1]} : vector<8x192xf32> to vector<8x64xf32>
    %25 = vector.extract_strided_slice %21 {offsets = [0, 64], sizes = [8, 64], strides = [1, 1]} : vector<8x192xf32> to vector<8x64xf32>
    %26 = vector.extract_strided_slice %21 {offsets = [0, 128], sizes = [8, 64], strides = [1, 1]} : vector<8x192xf32> to vector<8x64xf32>
    %27 = arith.mulf %25, %9 : vector<8x64xf32>
    %28 = arith.mulf %24, %23 : vector<8x64xf32>
    %29 = arith.addf %27, %28 : vector<8x64xf32>
    %30 = math.tanh %29 : vector<8x64xf32>
    %31 = arith.mulf %26, %30 : vector<8x64xf32>
    %c1_i32 = arith.constant 1 : i32
    %c8_i32_14 = arith.constant 8 : i32
    %32 = arith.muli %c1_i32, %c8_i32_14 : i32
    %33 = arith.index_cast %32 : i32 to index
    %c0_15 = arith.constant 0 : index
    %34 = vector.load %arg5[%33, %c0_15] : memref<64x256xf32, #tpu.memory_space<vmem>>, vector<8x256xf32>
    %35 = arith.truncf %31 : vector<8x64xf32> to vector<8x64xbf16>
    %cst_16 = arith.constant dense<0.000000e+00> : vector<8x256xf32>
    %36 = tpu.matmul %35, %7, %cst_16 {dimension_numbers = #tpu.dot_dimension_numbers<[1], [0], [0], [1], [0, 0, 1, 1], [], []>} : vector<8x64xbf16>, vector<64x256xbf16>, vector<8x256xf32> -> vector<8x256xf32>
    %37 = arith.addf %34, %36 : vector<8x256xf32>
    %38 = vector.extract_strided_slice %37 {offsets = [0, 0], sizes = [8, 192], strides = [1, 1]} : vector<8x256xf32> to vector<8x192xf32>
    %39 = arith.negf %38 : vector<8x192xf32>
    %40 = math.exp %39 : vector<8x192xf32>
    %cst_17 = arith.constant 1.000000e+00 : f32
    %41 = vector.broadcast %cst_17 : f32 to vector<8x192xf32>
    %42 = arith.addf %41, %40 : vector<8x192xf32>
    %43 = arith.divf %41, %42 : vector<8x192xf32>
    %44 = vector.extract_strided_slice %37 {offsets = [0, 192], sizes = [8, 64], strides = [1, 1]} : vector<8x256xf32> to vector<8x64xf32>
    %45 = math.tanh %44 : vector<8x64xf32>
    %46 = vector.extract_strided_slice %43 {offsets = [0, 0], sizes = [8, 64], strides = [1, 1]} : vector<8x192xf32> to vector<8x64xf32>
    %47 = vector.extract_strided_slice %43 {offsets = [0, 64], sizes = [8, 64], strides = [1, 1]} : vector<8x192xf32> to vector<8x64xf32>
    %48 = vector.extract_strided_slice %43 {offsets = [0, 128], sizes = [8, 64], strides = [1, 1]} : vector<8x192xf32> to vector<8x64xf32>
    %49 = arith.mulf %47, %29 : vector<8x64xf32>
    %50 = arith.mulf %46, %45 : vector<8x64xf32>
    %51 = arith.addf %49, %50 : vector<8x64xf32>
    %52 = math.tanh %51 : vector<8x64xf32>
    %53 = arith.mulf %48, %52 : vector<8x64xf32>
    %c2_i32 = arith.constant 2 : i32
    %c8_i32_18 = arith.constant 8 : i32
    %54 = arith.muli %c2_i32, %c8_i32_18 : i32
    %55 = arith.index_cast %54 : i32 to index
    %c0_19 = arith.constant 0 : index
    %56 = vector.load %arg5[%55, %c0_19] : memref<64x256xf32, #tpu.memory_space<vmem>>, vector<8x256xf32>
    %57 = arith.truncf %53 : vector<8x64xf32> to vector<8x64xbf16>
    %cst_20 = arith.constant dense<0.000000e+00> : vector<8x256xf32>
    %58 = tpu.matmul %57, %7, %cst_20 {dimension_numbers = #tpu.dot_dimension_numbers<[1], [0], [0], [1], [0, 0, 1, 1], [], []>} : vector<8x64xbf16>, vector<64x256xbf16>, vector<8x256xf32> -> vector<8x256xf32>
    %59 = arith.addf %56, %58 : vector<8x256xf32>
    %60 = vector.extract_strided_slice %59 {offsets = [0, 0], sizes = [8, 192], strides = [1, 1]} : vector<8x256xf32> to vector<8x192xf32>
    %61 = arith.negf %60 : vector<8x192xf32>
    %62 = math.exp %61 : vector<8x192xf32>
    %cst_21 = arith.constant 1.000000e+00 : f32
    %63 = vector.broadcast %cst_21 : f32 to vector<8x192xf32>
    %64 = arith.addf %63, %62 : vector<8x192xf32>
    %65 = arith.divf %63, %64 : vector<8x192xf32>
    %66 = vector.extract_strided_slice %59 {offsets = [0, 192], sizes = [8, 64], strides = [1, 1]} : vector<8x256xf32> to vector<8x64xf32>
    %67 = math.tanh %66 : vector<8x64xf32>
    %68 = vector.extract_strided_slice %65 {offsets = [0, 0], sizes = [8, 64], strides = [1, 1]} : vector<8x192xf32> to vector<8x64xf32>
    %69 = vector.extract_strided_slice %65 {offsets = [0, 64], sizes = [8, 64], strides = [1, 1]} : vector<8x192xf32> to vector<8x64xf32>
    %70 = vector.extract_strided_slice %65 {offsets = [0, 128], sizes = [8, 64], strides = [1, 1]} : vector<8x192xf32> to vector<8x64xf32>
    %71 = arith.mulf %69, %51 : vector<8x64xf32>
    %72 = arith.mulf %68, %67 : vector<8x64xf32>
    %73 = arith.addf %71, %72 : vector<8x64xf32>
    %74 = math.tanh %73 : vector<8x64xf32>
    %75 = arith.mulf %70, %74 : vector<8x64xf32>
    %c3_i32 = arith.constant 3 : i32
    %c8_i32_22 = arith.constant 8 : i32
    %76 = arith.muli %c3_i32, %c8_i32_22 : i32
    %77 = arith.index_cast %76 : i32 to index
    %c0_23 = arith.constant 0 : index
    %78 = vector.load %arg5[%77, %c0_23] : memref<64x256xf32, #tpu.memory_space<vmem>>, vector<8x256xf32>
    %79 = arith.truncf %75 : vector<8x64xf32> to vector<8x64xbf16>
    %cst_24 = arith.constant dense<0.000000e+00> : vector<8x256xf32>
    %80 = tpu.matmul %79, %7, %cst_24 {dimension_numbers = #tpu.dot_dimension_numbers<[1], [0], [0], [1], [0, 0, 1, 1], [], []>} : vector<8x64xbf16>, vector<64x256xbf16>, vector<8x256xf32> -> vector<8x256xf32>
    %81 = arith.addf %78, %80 : vector<8x256xf32>
    %82 = vector.extract_strided_slice %81 {offsets = [0, 0], sizes = [8, 192], strides = [1, 1]} : vector<8x256xf32> to vector<8x192xf32>
    %83 = arith.negf %82 : vector<8x192xf32>
    %84 = math.exp %83 : vector<8x192xf32>
    %cst_25 = arith.constant 1.000000e+00 : f32
    %85 = vector.broadcast %cst_25 : f32 to vector<8x192xf32>
    %86 = arith.addf %85, %84 : vector<8x192xf32>
    %87 = arith.divf %85, %86 : vector<8x192xf32>
    %88 = vector.extract_strided_slice %81 {offsets = [0, 192], sizes = [8, 64], strides = [1, 1]} : vector<8x256xf32> to vector<8x64xf32>
    %89 = math.tanh %88 : vector<8x64xf32>
    %90 = vector.extract_strided_slice %87 {offsets = [0, 0], sizes = [8, 64], strides = [1, 1]} : vector<8x192xf32> to vector<8x64xf32>
    %91 = vector.extract_strided_slice %87 {offsets = [0, 64], sizes = [8, 64], strides = [1, 1]} : vector<8x192xf32> to vector<8x64xf32>
    %92 = vector.extract_strided_slice %87 {offsets = [0, 128], sizes = [8, 64], strides = [1, 1]} : vector<8x192xf32> to vector<8x64xf32>
    %93 = arith.mulf %91, %73 : vector<8x64xf32>
    %94 = arith.mulf %90, %89 : vector<8x64xf32>
    %95 = arith.addf %93, %94 : vector<8x64xf32>
    %96 = math.tanh %95 : vector<8x64xf32>
    %97 = arith.mulf %92, %96 : vector<8x64xf32>
    %c4_i32 = arith.constant 4 : i32
    %c8_i32_26 = arith.constant 8 : i32
    %98 = arith.muli %c4_i32, %c8_i32_26 : i32
    %99 = arith.index_cast %98 : i32 to index
    %c0_27 = arith.constant 0 : index
    %100 = vector.load %arg5[%99, %c0_27] : memref<64x256xf32, #tpu.memory_space<vmem>>, vector<8x256xf32>
    %101 = arith.truncf %97 : vector<8x64xf32> to vector<8x64xbf16>
    %cst_28 = arith.constant dense<0.000000e+00> : vector<8x256xf32>
    %102 = tpu.matmul %101, %7, %cst_28 {dimension_numbers = #tpu.dot_dimension_numbers<[1], [0], [0], [1], [0, 0, 1, 1], [], []>} : vector<8x64xbf16>, vector<64x256xbf16>, vector<8x256xf32> -> vector<8x256xf32>
    %103 = arith.addf %100, %102 : vector<8x256xf32>
    %104 = vector.extract_strided_slice %103 {offsets = [0, 0], sizes = [8, 192], strides = [1, 1]} : vector<8x256xf32> to vector<8x192xf32>
    %105 = arith.negf %104 : vector<8x192xf32>
    %106 = math.exp %105 : vector<8x192xf32>
    %cst_29 = arith.constant 1.000000e+00 : f32
    %107 = vector.broadcast %cst_29 : f32 to vector<8x192xf32>
    %108 = arith.addf %107, %106 : vector<8x192xf32>
    %109 = arith.divf %107, %108 : vector<8x192xf32>
    %110 = vector.extract_strided_slice %103 {offsets = [0, 192], sizes = [8, 64], strides = [1, 1]} : vector<8x256xf32> to vector<8x64xf32>
    %111 = math.tanh %110 : vector<8x64xf32>
    %112 = vector.extract_strided_slice %109 {offsets = [0, 0], sizes = [8, 64], strides = [1, 1]} : vector<8x192xf32> to vector<8x64xf32>
    %113 = vector.extract_strided_slice %109 {offsets = [0, 64], sizes = [8, 64], strides = [1, 1]} : vector<8x192xf32> to vector<8x64xf32>
    %114 = vector.extract_strided_slice %109 {offsets = [0, 128], sizes = [8, 64], strides = [1, 1]} : vector<8x192xf32> to vector<8x64xf32>
    %115 = arith.mulf %113, %95 : vector<8x64xf32>
    %116 = arith.mulf %112, %111 : vector<8x64xf32>
    %117 = arith.addf %115, %116 : vector<8x64xf32>
    %118 = math.tanh %117 : vector<8x64xf32>
    %119 = arith.mulf %114, %118 : vector<8x64xf32>
    %c5_i32 = arith.constant 5 : i32
    %c8_i32_30 = arith.constant 8 : i32
    %120 = arith.muli %c5_i32, %c8_i32_30 : i32
    %121 = arith.index_cast %120 : i32 to index
    %c0_31 = arith.constant 0 : index
    %122 = vector.load %arg5[%121, %c0_31] : memref<64x256xf32, #tpu.memory_space<vmem>>, vector<8x256xf32>
    %123 = arith.truncf %119 : vector<8x64xf32> to vector<8x64xbf16>
    %cst_32 = arith.constant dense<0.000000e+00> : vector<8x256xf32>
    %124 = tpu.matmul %123, %7, %cst_32 {dimension_numbers = #tpu.dot_dimension_numbers<[1], [0], [0], [1], [0, 0, 1, 1], [], []>} : vector<8x64xbf16>, vector<64x256xbf16>, vector<8x256xf32> -> vector<8x256xf32>
    %125 = arith.addf %122, %124 : vector<8x256xf32>
    %126 = vector.extract_strided_slice %125 {offsets = [0, 0], sizes = [8, 192], strides = [1, 1]} : vector<8x256xf32> to vector<8x192xf32>
    %127 = arith.negf %126 : vector<8x192xf32>
    %128 = math.exp %127 : vector<8x192xf32>
    %cst_33 = arith.constant 1.000000e+00 : f32
    %129 = vector.broadcast %cst_33 : f32 to vector<8x192xf32>
    %130 = arith.addf %129, %128 : vector<8x192xf32>
    %131 = arith.divf %129, %130 : vector<8x192xf32>
    %132 = vector.extract_strided_slice %125 {offsets = [0, 192], sizes = [8, 64], strides = [1, 1]} : vector<8x256xf32> to vector<8x64xf32>
    %133 = math.tanh %132 : vector<8x64xf32>
    %134 = vector.extract_strided_slice %131 {offsets = [0, 0], sizes = [8, 64], strides = [1, 1]} : vector<8x192xf32> to vector<8x64xf32>
    %135 = vector.extract_strided_slice %131 {offsets = [0, 64], sizes = [8, 64], strides = [1, 1]} : vector<8x192xf32> to vector<8x64xf32>
    %136 = vector.extract_strided_slice %131 {offsets = [0, 128], sizes = [8, 64], strides = [1, 1]} : vector<8x192xf32> to vector<8x64xf32>
    %137 = arith.mulf %135, %117 : vector<8x64xf32>
    %138 = arith.mulf %134, %133 : vector<8x64xf32>
    %139 = arith.addf %137, %138 : vector<8x64xf32>
    %140 = math.tanh %139 : vector<8x64xf32>
    %141 = arith.mulf %136, %140 : vector<8x64xf32>
    %c6_i32 = arith.constant 6 : i32
    %c8_i32_34 = arith.constant 8 : i32
    %142 = arith.muli %c6_i32, %c8_i32_34 : i32
    %143 = arith.index_cast %142 : i32 to index
    %c0_35 = arith.constant 0 : index
    %144 = vector.load %arg5[%143, %c0_35] : memref<64x256xf32, #tpu.memory_space<vmem>>, vector<8x256xf32>
    %145 = arith.truncf %141 : vector<8x64xf32> to vector<8x64xbf16>
    %cst_36 = arith.constant dense<0.000000e+00> : vector<8x256xf32>
    %146 = tpu.matmul %145, %7, %cst_36 {dimension_numbers = #tpu.dot_dimension_numbers<[1], [0], [0], [1], [0, 0, 1, 1], [], []>} : vector<8x64xbf16>, vector<64x256xbf16>, vector<8x256xf32> -> vector<8x256xf32>
    %147 = arith.addf %144, %146 : vector<8x256xf32>
    %148 = vector.extract_strided_slice %147 {offsets = [0, 0], sizes = [8, 192], strides = [1, 1]} : vector<8x256xf32> to vector<8x192xf32>
    %149 = arith.negf %148 : vector<8x192xf32>
    %150 = math.exp %149 : vector<8x192xf32>
    %cst_37 = arith.constant 1.000000e+00 : f32
    %151 = vector.broadcast %cst_37 : f32 to vector<8x192xf32>
    %152 = arith.addf %151, %150 : vector<8x192xf32>
    %153 = arith.divf %151, %152 : vector<8x192xf32>
    %154 = vector.extract_strided_slice %147 {offsets = [0, 192], sizes = [8, 64], strides = [1, 1]} : vector<8x256xf32> to vector<8x64xf32>
    %155 = math.tanh %154 : vector<8x64xf32>
    %156 = vector.extract_strided_slice %153 {offsets = [0, 0], sizes = [8, 64], strides = [1, 1]} : vector<8x192xf32> to vector<8x64xf32>
    %157 = vector.extract_strided_slice %153 {offsets = [0, 64], sizes = [8, 64], strides = [1, 1]} : vector<8x192xf32> to vector<8x64xf32>
    %158 = vector.extract_strided_slice %153 {offsets = [0, 128], sizes = [8, 64], strides = [1, 1]} : vector<8x192xf32> to vector<8x64xf32>
    %159 = arith.mulf %157, %139 : vector<8x64xf32>
    %160 = arith.mulf %156, %155 : vector<8x64xf32>
    %161 = arith.addf %159, %160 : vector<8x64xf32>
    %162 = math.tanh %161 : vector<8x64xf32>
    %163 = arith.mulf %158, %162 : vector<8x64xf32>
    %c7_i32 = arith.constant 7 : i32
    %c8_i32_38 = arith.constant 8 : i32
    %164 = arith.muli %c7_i32, %c8_i32_38 : i32
    %165 = arith.index_cast %164 : i32 to index
    %c0_39 = arith.constant 0 : index
    %166 = vector.load %arg5[%165, %c0_39] : memref<64x256xf32, #tpu.memory_space<vmem>>, vector<8x256xf32>
    %167 = arith.truncf %163 : vector<8x64xf32> to vector<8x64xbf16>
    %cst_40 = arith.constant dense<0.000000e+00> : vector<8x256xf32>
    %168 = tpu.matmul %167, %7, %cst_40 {dimension_numbers = #tpu.dot_dimension_numbers<[1], [0], [0], [1], [0, 0, 1, 1], [], []>} : vector<8x64xbf16>, vector<64x256xbf16>, vector<8x256xf32> -> vector<8x256xf32>
    %169 = arith.addf %166, %168 : vector<8x256xf32>
    %170 = vector.extract_strided_slice %169 {offsets = [0, 0], sizes = [8, 192], strides = [1, 1]} : vector<8x256xf32> to vector<8x192xf32>
    %171 = arith.negf %170 : vector<8x192xf32>
    %172 = math.exp %171 : vector<8x192xf32>
    %cst_41 = arith.constant 1.000000e+00 : f32
    %173 = vector.broadcast %cst_41 : f32 to vector<8x192xf32>
    %174 = arith.addf %173, %172 : vector<8x192xf32>
    %175 = arith.divf %173, %174 : vector<8x192xf32>
    %176 = vector.extract_strided_slice %169 {offsets = [0, 192], sizes = [8, 64], strides = [1, 1]} : vector<8x256xf32> to vector<8x64xf32>
    %177 = math.tanh %176 : vector<8x64xf32>
    %178 = vector.extract_strided_slice %175 {offsets = [0, 0], sizes = [8, 64], strides = [1, 1]} : vector<8x192xf32> to vector<8x64xf32>
    %179 = vector.extract_strided_slice %175 {offsets = [0, 64], sizes = [8, 64], strides = [1, 1]} : vector<8x192xf32> to vector<8x64xf32>
    %180 = vector.extract_strided_slice %175 {offsets = [0, 128], sizes = [8, 64], strides = [1, 1]} : vector<8x192xf32> to vector<8x64xf32>
    %181 = arith.mulf %179, %161 : vector<8x64xf32>
    %182 = arith.mulf %178, %177 : vector<8x64xf32>
    %183 = arith.addf %181, %182 : vector<8x64xf32>
    %184 = math.tanh %183 : vector<8x64xf32>
    %185 = arith.mulf %180, %184 : vector<8x64xf32>
    %c8_i32_42 = arith.constant 8 : i32
    %c0_43 = arith.constant 0 : index
    %c0_44 = arith.constant 0 : index
    %186 = vector.load %arg4[%c0_43, %c0_44] : memref<8x64xf32, #tpu.memory_space<vmem>>, vector<8x64xf32>
    tpu.vector_store %arg4[%c0_43, %c0_44], %185 {strides = array<i32>} : memref<8x64xf32, #tpu.memory_space<vmem>>, vector<8x64xf32>,
    return
  }
}

</mosaic_0001>

<bundles_post_ra>
// kernel: tpu_custom_call.1
= control target key start
LH: loop header
LB: loop body
LE: loop exit
PB: predicated region body
PF: predicated region fallthrough
CT: control target
= control target key end

     0   :  { %9 = vsyncpa [#allocation4], 0  ;;  %s1492_s0 = inlined_call_operand.hbm [shape: bf16[64,64], index: 0, kind: input, shape index: {}]   ;;  %s1493_s1 = inlined_call_operand.hbm [shape: bf16[64,256], index: 1, kind: input, shape index: {}]   ;;  %s1494_s2 = inlined_call_operand.hbm [shape: bf16[64,256], index: 2, kind: input, shape index: {}]   ;;  %s1495_s3 = inlined_call_operand.vmem [shape: f32[1,256], index: 3, kind: input, shape index: {}]   ;;  %s1496_s4 = inlined_call_operand.hbm [shape: f32[8,64], index: 4, kind: output, shape index: {}]  }
   0x1   :  { %10 = vsyncpa [#allocation7], 0 }
   0x2   :  { %11 = vsyncpa [#allocation5], 0  ;;  %s1220_s15 = smov [#allocation6]   ;;  %s1126_s19 = scalar_lea.hbm %s1493_s1, 1024 }
   0x3   :  { %s29_s16 = sshll.u32 %s1220_s15, 4  ;;  %p1127_p0 = scmp.ne.s32.totalorder %s1493_s1, %s1126_s19  ;;  %s30_s16 = int_to_ptr.vmem [resolvable:$true] %s29_s16 }
   0x4   :  { %p1130_p1 = scmp.lt.u32.totalorder %s1126_s19, %s1493_s1 }
   0x6   :  { %p1132_p2 = pnand %p1130_p1, %p1127_p0 }
   0x8   :  { %1135 = shalt.err (!%p1132_p2)
}
   0x9   :  { %s1136_s24 = scalar_lea.vmem %s30_s16, 1024  ;;  %p1141_p4 = scmp.lt.s32.totalorder %s30_s16, %s30_s16 }
   0xa   :  { %p1137_p3 = scmp.ne.s32.totalorder %s30_s16, %s1136_s24  ;;  %p1142_p5 = scmp.lt.s32.totalorder %s1136_s24, %s1136_s24 }
   0xc   :  { %p1143_p6 = por %p1142_p5, %p1141_p4 }
   0xe   :  { %p1144_p7 = pnand %p1143_p6, %p1137_p3 }
  0x10   :  { %1147 = shalt.err (!%p1144_p7)
}
  0x11   :  { %s1221_s25 = smov 128   ;;  %s1222_s26 = smov 8  }
  0x12   :  { %35 = dma.hbm_to_vmem [thread:$0]  %s1493_s1, 1024, %s30_s16, [#allocation7], %s1221_s25, %s1221_s25, %s1222_s26  }
  0x13   :  { %s1223_s29 = smov [#allocation3]   ;;  %s1148_s7 = scalar_lea.hbm %s1492_s0, 512 }
  0x14   :  { %s17_s30 = sshll.u32 %s1223_s29, 4  ;;  %p1149_p8 = scmp.ne.s32.totalorder %s1492_s0, %s1148_s7  ;;  %s18_s30 = int_to_ptr.vmem [resolvable:$true] %s17_s30 }
  0x15   :  { %p1152_p9 = scmp.lt.u32.totalorder %s1148_s7, %s1492_s0 }
  0x17   :  { %p1154_p10 = pnand %p1152_p9, %p1149_p8 }
  0x19   :  { %1157 = shalt.err (!%p1154_p10)
}
  0x1a   :  { %s1158_s12 = scalar_lea.vmem %s18_s30, 512  ;;  %p1163_p12 = scmp.lt.s32.totalorder %s18_s30, %s18_s30 }
  0x1b   :  { %p1159_p11 = scmp.ne.s32.totalorder %s18_s30, %s1158_s12  ;;  %p1164_p13 = scmp.lt.s32.totalorder %s1158_s12, %s1158_s12 }
  0x1d   :  { %p1165_p0 = por %p1164_p13, %p1163_p12 }
  0x1f   :  { %p1166_p1 = pnand %p1165_p0, %p1159_p11 }
  0x21   :  { %1169 = shalt.err (!%p1166_p1)
}
  0x22   :  { %s1224_s1 = smov 64   ;;  %s1225_s13 = smov 4  }
  0x23   :  { %23 = dma.hbm_to_vmem [thread:$0]  %s1492_s0, 512, %s18_s30, [#allocation4], %s1224_s1, %s1224_s1, %s1225_s13  }
  0x24   :  { %s1226_s16 = smov [#allocation8]   ;;  %s1170_s20 = scalar_lea.hbm %s1494_s2, 1024 }
  0x25   :  { %s41_s17 = sshll.u32 %s1226_s16, 4  ;;  %p1171_p2 = scmp.ne.s32.totalorder %s1494_s2, %s1170_s20  ;;  %s42_s17 = int_to_ptr.vmem [resolvable:$true] %s41_s17 }
  0x26   :  { %p1174_p3 = scmp.lt.u32.totalorder %s1170_s20, %s1494_s2 }
  0x28   :  { %p1176_p4 = pnand %p1174_p3, %p1171_p2 }
  0x2a   :  { %1179 = shalt.err (!%p1176_p4)
}
  0x2b   :  { %s1180_s27 = scalar_lea.vmem %s42_s17, 1024  ;;  %p1185_p6 = scmp.lt.s32.totalorder %s42_s17, %s42_s17 }
  0x2c   :  { %p1181_p5 = scmp.ne.s32.totalorder %s42_s17, %s1180_s27  ;;  %p1186_p7 = scmp.lt.s32.totalorder %s1180_s27, %s1180_s27 }
  0x2e   :  { %p1187_p8 = por %p1186_p7, %p1185_p6 }
  0x30   :  { %p1188_p9 = pnand %p1187_p8, %p1181_p5 }
  0x32   :  { %1191 = shalt.err (!%p1188_p9)
}
  0x33   :  { %47 = dma.hbm_to_vmem [thread:$0]  %s1494_s2, 1024, %s42_s17, [#allocation7], %s1221_s25, %s1221_s25, %s1222_s26  }
  0x34   :  { %1214 = dma.done.wait [#allocation4], 512  }
  0x35   :  { %1215 = vsyncadd [#allocation4], 4294966784 }
  0x36   :  { %1216 = dma.done.wait [#allocation7], 2048  }
  0x37   :  { %1217 = vsyncadd [#allocation7], 4294965248  ;;  %v1227_v0 = vmov 0   ;;  %v1002_v1 = vld [vmem:[#allocation6 + $0x4] ss:$8 sps:$4 sm:$0xff]   ;;  %vm148_vm0 = vcmask 523264   ;;  %v78_v18 = vlaneseq }
  0x38   :  { %193 = vmatprep.mubr.bf16.mxu0 %v1227_v0  ;;  %335 = vmatprep.mubr.bf16.mxu1 %v1227_v0  ;;  %v1300_v2 = vld [vmem:[#allocation8 + $0x4] ss:$8 sps:$4 sm:$0xff]   ;;  %v1006_v3 = vld [vmem:[#allocation6] ss:$8 sps:$4 sm:$0xff]   ;;  %v1008_v5 = vld [vmem:[#allocation6 + $0x14] ss:$8 sps:$4 sm:$0xff]  }
  0x39   :  { %161 = vmatprep.subr.bf16.mxu0 %v1002_v1  ;;  %v1302_v4 = vld [vmem:[#allocation8] ss:$8 sps:$4 sm:$0xff]   ;;  %303 = vmatprep.subr.bf16.mxu1 %v1300_v2  ;;  %v1306_v6 = vld [vmem:[#allocation8 + $0x14] ss:$8 sps:$4 sm:$0xff]   ;;  %v1012_v7 = vld [vmem:[#allocation6 + $0x10] ss:$8 sps:$4 sm:$0xff]  }
  0x3a   :  { %162 = vmatpush1.bf16.msra.mxu0 %v1006_v3  ;;  %304 = vmatpush1.bf16.msra.mxu1 %v1302_v4  ;;  %v1308_v8 = vld [vmem:[#allocation8 + $0x10] ss:$8 sps:$4 sm:$0xff]   ;;  %v1014_v9 = vld [vmem:[#allocation6 + $0x24] ss:$8 sps:$4 sm:$0xff]   ;;  %v1018_v11 = vld [vmem:[#allocation6 + $0x20] ss:$8 sps:$4 sm:$0xff]  }
  0x3b   :  { %163 = vmatprep.subr.bf16.mxu0 %v1008_v5  ;;  %305 = vmatprep.subr.bf16.mxu1 %v1306_v6  ;;  %v1311_v10 = vld [vmem:[#allocation8 + $0x24] ss:$8 sps:$4 sm:$0xff]   ;;  %v1313_v12 = vld [vmem:[#allocation8 + $0x20] ss:$8 sps:$4 sm:$0xff]   ;;  %v1020_v13 = vld [vmem:[#allocation6 + $0x34] ss:$8 sps:$4 sm:$0xff]  }
  0x3c   :  { %v1317_v14 = vld [vmem:[#allocation8 + $0x34] ss:$8 sps:$4 sm:$0xff]   ;;  %v1024_v15 = vld [vmem:[#allocation6 + $0x30] ss:$8 sps:$4 sm:$0xff]   ;;  %v1026_v17 = vld [vmem:[#allocation3] sm:$0xff]   ;;  %v79_v19 = vshrl.u32 %v78_v18, 7 }
  0x3d   :  { %v1319_v16 = vld [vmem:[#allocation8 + $0x30] ss:$8 sps:$4 sm:$0xff]   ;;  %v76_v21 = vld [vmem:[%s1495_s3] sm:$0x3]  ;;  %s1228_s3 = smov [#allocation9]  }
  0x3e   :  { %164 = vmatpush1.bf16.msra.mxu0 %v1012_v7  ;;  %306 = vmatpush1.bf16.msra.mxu1 %v1308_v8  ;;  %v80_v20 = vsub.s32 0, %v79_v19  ;;  %v84_v22 = vsub.s32 1, %v79_v19  ;;  %s936_s26 = sshll.u32 %s1228_s3, 4  ;;  %s937_s26 = int_to_ptr.vmem [resolvable:$true] %s936_s26 }
  0x3f   :  { %165 = vmatprep.subr.bf16.mxu0 %v1014_v9  ;;  %307 = vmatprep.subr.bf16.mxu1 %v1311_v10  ;;  %s1192_s29 = scalar_lea.vmem %s937_s26, 128  ;;  %p1197_p11 = scmp.lt.s32.totalorder %s937_s26, %s937_s26 }
  0x40   :  { %v1349_v23 = vrot.slane %v76_v21, %v80_v20  ;;  %v1351_v24 = vrot.slane %v76_v21, %v84_v22  ;;  %p1193_p10 = scmp.ne.s32.totalorder %s937_s26, %s1192_s29  ;;  %p1198_p12 = scmp.lt.s32.totalorder %s1192_s29, %s1192_s29 }
  0x42   :  { %166 = vmatpush1.bf16.msra.mxu0 %v1018_v11  ;;  %308 = vmatpush1.bf16.msra.mxu1 %v1313_v12  ;;  %p1199_p13 = por %p1198_p12, %p1197_p11 }
  0x43   :  { %167 = vmatprep.subr.bf16.mxu0 %v1020_v13  ;;  %309 = vmatprep.subr.bf16.mxu1 %v1317_v14  ;;  %v1027_v13 = vld [vmem:[#allocation3 + $0x8] sm:$0xff]  }
  0x44   :  { %p1200_p0 = pnand %p1199_p13, %p1193_p10 }
  0x46   :  { %168 = vmatpush1.bf16.msra.mxu0 %v1024_v15  ;;  %310 = vmatpush1.bf16.msra.mxu1 %v1319_v16  ;;  %v1028_v15 = vld [vmem:[#allocation3 + $0x10] sm:$0xff]  }
  0x47   :  { %382 = vmatprep.subr.bf16.mxu1 %v1300_v2  ;;  %461 = vmatprep.subr.bf16.mxu0 %v1300_v2 }
  0x49   :  { %958 = vmatmul.mubr.msk.bf16.vlgmr.msra.gmra.mrb[0].mxu0 %vm148_vm0, %v1026_v17  ;;  %336 = vmatmul.mubr.bf16.vlgmr.msra.gmra.mrb[0].mxu1 %v1227_v0  ;;  %v1029_v17 = vld [vmem:[#allocation3 + $0x18] sm:$0xff]  }
  0x4a   :  { %383 = vmatpush1.bf16.msra.mxu1 %v1302_v4  ;;  %414 = vmatprep.mubr.bf16.mxu1 %v1227_v0 }
  0x4b   :  { %384 = vmatprep.subr.bf16.mxu1 %v1306_v6  ;;  %462 = vmatpush1.bf16.msra.mxu0 %v1302_v4 }
  0x4c   :  { %203 = vmatprep.mubr.bf16.mxu0 %v1227_v0  ;;  %463 = vmatprep.subr.bf16.mxu0 %v1306_v6 }
  0x4e   :  { %385 = vmatpush1.bf16.msra.mxu1 %v1308_v8 }
  0x4f   :  { %386 = vmatprep.subr.bf16.mxu1 %v1311_v10  ;;  %464 = vmatpush1.bf16.msra.mxu0 %v1308_v8 }
  0x50   :  { %465 = vmatprep.subr.bf16.mxu0 %v1311_v10 }
  0x51   :  { %959 = vmatmul.mubr.msk.bf16.gmra.mrb[4].mxu0 %vm148_vm0, %v1027_v13 }
  0x52   :  { %387 = vmatpush1.bf16.msra.mxu1 %v1313_v12  ;;  %213 = vmatprep.mubr.bf16.mxu0 %v1227_v0 }
  0x53   :  { %388 = vmatprep.subr.bf16.mxu1 %v1317_v14  ;;  %466 = vmatpush1.bf16.msra.mxu0 %v1313_v12 }
  0x54   :  { %467 = vmatprep.subr.bf16.mxu0 %v1317_v14 }
  0x56   :  { %389 = vmatpush1.bf16.msra.mxu1 %v1319_v16 }
  0x57   :  { %468 = vmatpush1.bf16.msra.mxu0 %v1319_v16  ;;  %540 = vmatprep.subr.bf16.mxu1 %v1300_v2 }
  0x58   :  { %619 = vmatprep.subr.bf16.mxu0 %v1300_v2 }
  0x59   :  { %960 = vmatmul.mubr.msk.bf16.gmra.mrb[8].mxu0 %vm148_vm0, %v1028_v15 }
  0x5a   :  { %223 = vmatprep.mubr.bf16.mxu0 %v1227_v0 }
  0x61   :  { %961 = vmatmul.mubr.msk.bf16.gmra.mrb[12].mxu0 %vm148_vm0, %v1029_v17 }
  0x62   :  { %493 = vmatprep.mubr.bf16.mxu0 %v1227_v0 }
 0x11c   :  { %v195_v25 = vpop.f32.mrb[0].mxu0  ;;  %v337_v26 = vpop.f32.mrb[0].mxu1 }
 0x11d   :  { %v196_v27 = vadd.f32 %v195_v25, %v1349_v23  ;;  %v197_v28 = vpop.f32.mrb[1].mxu0  ;;  %v339_v29 = vpop.f32.mrb[1].mxu1 }
 0x11e   :  { %v198_v30 = vadd.f32 %v197_v28, %v1351_v24  ;;  %v199_v31 = vpop.f32.mrb[2].mxu0  ;;  %v341_v32 = vpop.f32.mrb[2].mxu1 }
 0x11f   :  { %v344_v33 = vadd.f32 %v337_v26, %v196_v27  ;;  %v201_v34 = vpop.f32.mrb[3].mxu0  ;;  %v342_v35 = vpop.f32.mrb[3].mxu1  ;;  %v200_v55 = vadd.f32 %v199_v31, %v1349_v23 }
 0x120   :  { %v345_v36 = vadd.f32 %v339_v29, %v198_v30  ;;  %v202_v56 = vadd.f32 %v201_v34, %v1351_v24 }
 0x121   :  { %v970_v38 = vmul.f32 -1.442695, %v344_v33 }
 0x122   :  { %1030 = vtanh.f32 %v345_v36  ;;  %v971_v48 = vmul.f32 -1.442695, %v345_v36 }
 0x123   :  { %1032 = vpow2.f32 %v970_v38 }
 0x124   :  { %v205_v25 = vpop.f32.mrb[4].mxu0 }
 0x125   :  { %v207_v26 = vpop.f32.mrb[5].mxu0 }
 0x126   :  { %v1379_v27 = vpop.f32.mrb[6].mxu0 }
 0x127   :  { %v1381_v28 = vpop.f32.mrb[7].mxu0 }
 0x128   :  { %v212_v13 = vadd.f32 %v1381_v28, %v1351_v24 }
 0x12c   :  { %v1031_v37 = vpop.eup %1030  ;;  %v1383_v29 = vpop.f32.mrb[8].mxu0 }
 0x12d   :  { %361 = vrot.lane.b32.xlu0 %v1031_v37, %s1224_s1  ;;  %v1033_v39 = vpop.eup %1032  ;;  %v1385_v30 = vpop.f32.mrb[9].mxu0 }
 0x12e   :  { %v352_v40 = vadd.f32 1.0, %v1033_v39  ;;  %v1387_v31 = vpop.f32.mrb[10].mxu0 }
 0x12f   :  { %v1389_v32 = vpop.f32.mrb[11].mxu0 }
 0x130   :  { %1034 = vrcp.f32 %v352_v40 }
 0x134   :  { %v1391_v35 = vpop.f32.mrb[12].mxu0 }
 0x135   :  { %v1393_v36 = vpop.f32.mrb[13].mxu0 }
 0x136   :  { %v1395_v37 = vpop.f32.mrb[14].mxu0 }
 0x137   :  { %v1397_v38 = vpop.f32.mrb[15].mxu0 }
 0x13a   :  { %v1035_v41 = vpop.eup %1034 }
 0x13b   :  { %v359_v44 = vmul.f32 0.0, %v1035_v41 }
 0x19f   :  { %v362_v42 = vpop.permute.xlu0 %361 }
 0x1a0   :  { %v364_v43 = vmul.f32 %v1035_v41, %v362_v42 }
 0x1a2   :  { %366 = vrot.lane.b32.xlu0 %v364_v43, %s1224_s1  ;;  %v206_v43 = vadd.f32 %v205_v25, %v1349_v23 }
 0x214   :  { %v367_v45 = vpop.permute.xlu0 %366 }
 0x215   :  { %v369_v46 = vadd.f32 %v367_v45, %v359_v44  ;;  %v208_v44 = vadd.f32 %v207_v26, %v1351_v24 }
 0x217   :  { %1036 = vtanh.f32 %v369_v46 }
 0x218   :  { %1038 = vpow2.f32 %v971_v48 }
 0x221   :  { %v1037_v47 = vpop.eup %1036 }
 0x222   :  { %372 = vrot.lane.b32.xlu1 %v1037_v47, %s1224_s1  ;;  %v1039_v49 = vpop.eup %1038 }
 0x223   :  { %v353_v50 = vadd.f32 1.0, %v1039_v49 }
 0x225   :  { %1040 = vrcp.f32 %v353_v50 }
 0x22f   :  { %v1041_v51 = vpop.eup %1040 }
 0x294   :  { %v373_v52 = vpop.permute.xlu1 %372 }
 0x295   :  { %v375_v53 = vmul.f32 %v1041_v51, %v373_v52 }
 0x297   :  { %v378_v54 = vpack.c.bf16 %v375_v53, %v375_v53 }
 0x299   :  { %972 = vmatmul.mubr.msk.bf16.vlgmr.msra.gmra.mrb[4].mxu1 %vm148_vm0, %v378_v54 }
 0x29a   :  { %541 = vmatpush1.bf16.msra.mxu1 %v1302_v4  ;;  %572 = vmatprep.mubr.bf16.mxu1 %v1227_v0 }
 0x29b   :  { %542 = vmatprep.subr.bf16.mxu1 %v1306_v6 }
 0x29e   :  { %543 = vmatpush1.bf16.msra.mxu1 %v1308_v8 }
 0x29f   :  { %544 = vmatprep.subr.bf16.mxu1 %v1311_v10 }
 0x2a2   :  { %545 = vmatpush1.bf16.msra.mxu1 %v1313_v12 }
 0x2a3   :  { %546 = vmatprep.subr.bf16.mxu1 %v1317_v14 }
 0x2a6   :  { %547 = vmatpush1.bf16.msra.mxu1 %v1319_v16 }
 0x2a7   :  { %698 = vmatprep.subr.bf16.mxu1 %v1300_v2 }
 0x36c   :  { %v416_v57 = vpop.f32.mrb[4].mxu1 }
 0x36d   :  { %v423_v58 = vadd.f32 %v416_v57, %v200_v55  ;;  %v418_v59 = vpop.f32.mrb[5].mxu1 }
 0x36e   :  { %v424_v60 = vadd.f32 %v418_v59, %v202_v56  ;;  %v420_v61 = vpop.f32.mrb[6].mxu1 }
 0x36f   :  { %v421_v62 = vpop.f32.mrb[7].mxu1  ;;  %v973_v1 = vmul.f32 -1.442695, %v423_v58 }
 0x370   :  { %1042 = vtanh.f32 %v424_v60  ;;  %v974_v22 = vmul.f32 -1.442695, %v424_v60 }
 0x371   :  { %1044 = vpow2.f32 %v973_v1 }
 0x37a   :  { %v1043_v63 = vpop.eup %1042 }
 0x37b   :  { %440 = vrot.lane.b32.xlu1 %v1043_v63, %s1224_s1  ;;  %v1045_v3 = vpop.eup %1044 }
 0x37c   :  { %v431_v5 = vadd.f32 1.0, %v1045_v3 }
 0x37e   :  { %1046 = vrcp.f32 %v431_v5 }
 0x388   :  { %v1047_v7 = vpop.eup %1046 }
 0x389   :  { %v438_v18 = vmul.f32 %v1047_v7, %v369_v46 }
 0x3ed   :  { %v441_v9 = vpop.permute.xlu1 %440 }
 0x3ee   :  { %v443_v11 = vmul.f32 %v1047_v7, %v441_v9 }
 0x3f0   :  { %445 = vrot.lane.b32.xlu0 %v443_v11, %s1224_s1  ;;  %v210_v11 = vadd.f32 %v1379_v27, %v1349_v23 }
 0x462   :  { %v446_v19 = vpop.permute.xlu0 %445 }
 0x463   :  { %v448_v20 = vadd.f32 %v446_v19, %v438_v18 }
 0x465   :  { %1048 = vtanh.f32 %v448_v20 }
 0x466   :  { %1050 = vpow2.f32 %v974_v22 }
 0x46f   :  { %v1049_v21 = vpop.eup %1048 }
 0x470   :  { %451 = vrot.lane.b32.xlu1 %v1049_v21, %s1224_s1  ;;  %v1051_v33 = vpop.eup %1050 }
 0x471   :  { %v432_v34 = vadd.f32 1.0, %v1051_v33 }
 0x473   :  { %1052 = vrcp.f32 %v432_v34 }
 0x47d   :  { %v1053_v39 = vpop.eup %1052 }
 0x4e2   :  { %v452_v40 = vpop.permute.xlu1 %451 }
 0x4e3   :  { %v454_v41 = vmul.f32 %v1053_v39, %v452_v40 }
 0x4e5   :  { %v457_v42 = vpack.c.bf16 %v454_v41, %v454_v41 }
 0x4e7   :  { %975 = vmatmul.mubr.msk.bf16.vlgmr.msra.gmra.mrb[16].mxu0 %vm148_vm0, %v457_v42 }
 0x4e8   :  { %620 = vmatpush1.bf16.msra.mxu0 %v1302_v4  ;;  %651 = vmatprep.mubr.bf16.mxu0 %v1227_v0 }
 0x4e9   :  { %621 = vmatprep.subr.bf16.mxu0 %v1306_v6 }
 0x4ec   :  { %622 = vmatpush1.bf16.msra.mxu0 %v1308_v8 }
 0x4ed   :  { %623 = vmatprep.subr.bf16.mxu0 %v1311_v10 }
 0x4f0   :  { %624 = vmatpush1.bf16.msra.mxu0 %v1313_v12 }
 0x4f1   :  { %625 = vmatprep.subr.bf16.mxu0 %v1317_v14 }
 0x4f4   :  { %626 = vmatpush1.bf16.msra.mxu0 %v1319_v16 }
 0x4f5   :  { %777 = vmatprep.subr.bf16.mxu0 %v1300_v2 }
 0x5ba   :  { %v495_v45 = vpop.f32.mrb[16].mxu0 }
 0x5bb   :  { %v502_v46 = vadd.f32 %v495_v45, %v206_v43  ;;  %v497_v47 = vpop.f32.mrb[17].mxu0 }
 0x5bc   :  { %v503_v48 = vadd.f32 %v497_v47, %v208_v44  ;;  %v499_v49 = vpop.f32.mrb[18].mxu0 }
 0x5bd   :  { %v500_v50 = vpop.f32.mrb[19].mxu0  ;;  %v976_v52 = vmul.f32 -1.442695, %v502_v46  ;;  %v216_v49 = vadd.f32 %v1383_v29, %v1349_v23 }
 0x5be   :  { %1054 = vtanh.f32 %v503_v48  ;;  %v977_v62 = vmul.f32 -1.442695, %v503_v48  ;;  %v218_v50 = vadd.f32 %v1385_v30, %v1351_v24 }
 0x5bf   :  { %1056 = vpow2.f32 %v976_v52 }
 0x5c8   :  { %v1055_v51 = vpop.eup %1054 }
 0x5c9   :  { %519 = vrot.lane.b32.xlu0 %v1055_v51, %s1224_s1  ;;  %v1057_v53 = vpop.eup %1056 }
 0x5ca   :  { %v510_v54 = vadd.f32 1.0, %v1057_v53 }
 0x5cc   :  { %1058 = vrcp.f32 %v510_v54 }
 0x5d6   :  { %v1059_v55 = vpop.eup %1058 }
 0x5d7   :  { %v517_v58 = vmul.f32 %v1059_v55, %v448_v20 }
 0x63b   :  { %v520_v56 = vpop.permute.xlu0 %519 }
 0x63c   :  { %v522_v57 = vmul.f32 %v1059_v55, %v520_v56 }
 0x63e   :  { %524 = vrot.lane.b32.xlu1 %v522_v57, %s1224_s1 }
 0x6b0   :  { %v525_v59 = vpop.permute.xlu1 %524 }
 0x6b1   :  { %v527_v60 = vadd.f32 %v525_v59, %v517_v58 }
 0x6b3   :  { %1060 = vtanh.f32 %v527_v60 }
 0x6b4   :  { %1062 = vpow2.f32 %v977_v62 }
 0x6bd   :  { %v1061_v61 = vpop.eup %1060 }
 0x6be   :  { %530 = vrot.lane.b32.xlu0 %v1061_v61, %s1224_s1  ;;  %v1063_v63 = vpop.eup %1062 }
 0x6bf   :  { %v511_v1 = vadd.f32 1.0, %v1063_v63 }
 0x6c1   :  { %1064 = vrcp.f32 %v511_v1 }
 0x6cb   :  { %v1065_v3 = vpop.eup %1064 }
 0x730   :  { %v531_v5 = vpop.permute.xlu0 %530 }
 0x731   :  { %v533_v7 = vmul.f32 %v1065_v3, %v531_v5 }
 0x733   :  { %v536_v9 = vpack.c.bf16 %v533_v7, %v533_v7 }
 0x735   :  { %978 = vmatmul.mubr.msk.bf16.vlgmr.msra.gmra.mrb[8].mxu1 %vm148_vm0, %v536_v9 }
 0x736   :  { %699 = vmatpush1.bf16.msra.mxu1 %v1302_v4  ;;  %730 = vmatprep.mubr.bf16.mxu1 %v1227_v0 }
 0x737   :  { %700 = vmatprep.subr.bf16.mxu1 %v1306_v6 }
 0x73a   :  { %701 = vmatpush1.bf16.msra.mxu1 %v1308_v8 }
 0x73b   :  { %702 = vmatprep.subr.bf16.mxu1 %v1311_v10 }
 0x73e   :  { %703 = vmatpush1.bf16.msra.mxu1 %v1313_v12 }
 0x73f   :  { %704 = vmatprep.subr.bf16.mxu1 %v1317_v14 }
 0x742   :  { %705 = vmatpush1.bf16.msra.mxu1 %v1319_v16 }
 0x743   :  { %856 = vmatprep.subr.bf16.mxu1 %v1300_v2 }
 0x808   :  { %v574_v15 = vpop.f32.mrb[8].mxu1 }
 0x809   :  { %v581_v17 = vadd.f32 %v574_v15, %v210_v11  ;;  %v576_v18 = vpop.f32.mrb[9].mxu1 }
 0x80a   :  { %v582_v19 = vadd.f32 %v576_v18, %v212_v13  ;;  %v578_v20 = vpop.f32.mrb[10].mxu1  ;;  %v220_v18 = vadd.f32 %v1387_v31, %v1349_v23 }
 0x80b   :  { %v579_v21 = vpop.f32.mrb[11].mxu1  ;;  %v979_v25 = vmul.f32 -1.442695, %v581_v17 }
 0x80c   :  { %1066 = vtanh.f32 %v582_v19  ;;  %v980_v42 = vmul.f32 -1.442695, %v582_v19 }
 0x80d   :  { %1068 = vpow2.f32 %v979_v25 }
 0x816   :  { %v1067_v22 = vpop.eup %1066 }
 0x817   :  { %598 = vrot.lane.b32.xlu1 %v1067_v22, %s1224_s1  ;;  %v1069_v26 = vpop.eup %1068 }
 0x818   :  { %v589_v2 = vadd.f32 1.0, %v1069_v26 }
 0x81a   :  { %1070 = vrcp.f32 %v589_v2 }
 0x824   :  { %v1071_v33 = vpop.eup %1070 }
 0x825   :  { %v596_v28 = vmul.f32 %v1071_v33, %v527_v60 }
 0x889   :  { %v599_v27 = vpop.permute.xlu1 %598 }
 0x88a   :  { %v601_v34 = vmul.f32 %v1071_v33, %v599_v27 }
 0x88c   :  { %603 = vrot.lane.b32.xlu0 %v601_v34, %s1224_s1 }
 0x8fe   :  { %v604_v39 = vpop.permute.xlu0 %603 }
 0x8ff   :  { %v606_v40 = vadd.f32 %v604_v39, %v596_v28 }
 0x901   :  { %1072 = vtanh.f32 %v606_v40 }
 0x902   :  { %1074 = vpow2.f32 %v980_v42 }
 0x90b   :  { %v1073_v41 = vpop.eup %1072 }
 0x90c   :  { %609 = vrot.lane.b32.xlu1 %v1073_v41, %s1224_s1  ;;  %v1075_v43 = vpop.eup %1074 }
 0x90d   :  { %v590_v44 = vadd.f32 1.0, %v1075_v43  ;;  %v226_v43 = vadd.f32 %v1391_v35, %v1349_v23 }
 0x90f   :  { %1076 = vrcp.f32 %v590_v44  ;;  %v228_v44 = vadd.f32 %v1393_v36, %v1351_v24 }
 0x919   :  { %v1077_v45 = vpop.eup %1076 }
 0x97e   :  { %v610_v46 = vpop.permute.xlu1 %609 }
 0x97f   :  { %v612_v47 = vmul.f32 %v1077_v45, %v610_v46 }
 0x981   :  { %v615_v48 = vpack.c.bf16 %v612_v47, %v612_v47 }
 0x983   :  { %981 = vmatmul.mubr.msk.bf16.vlgmr.msra.gmra.mrb[20].mxu0 %vm148_vm0, %v615_v48 }
 0x984   :  { %778 = vmatpush1.bf16.msra.mxu0 %v1302_v4  ;;  %809 = vmatprep.mubr.bf16.mxu0 %v1227_v0 }
 0x985   :  { %779 = vmatprep.subr.bf16.mxu0 %v1306_v6 }
 0x988   :  { %780 = vmatpush1.bf16.msra.mxu0 %v1308_v8 }
 0x989   :  { %781 = vmatprep.subr.bf16.mxu0 %v1311_v10 }
 0x98c   :  { %782 = vmatpush1.bf16.msra.mxu0 %v1313_v12 }
 0x98d   :  { %783 = vmatprep.subr.bf16.mxu0 %v1317_v14 }
 0x990   :  { %784 = vmatpush1.bf16.msra.mxu0 %v1319_v16 }
 0xa56   :  { %v653_v51 = vpop.f32.mrb[20].mxu0 }
 0xa57   :  { %v660_v52 = vadd.f32 %v653_v51, %v216_v49  ;;  %v655_v53 = vpop.f32.mrb[21].mxu0 }
 0xa58   :  { %v661_v54 = vadd.f32 %v655_v53, %v218_v50  ;;  %v657_v55 = vpop.f32.mrb[22].mxu0 }
 0xa59   :  { %v658_v56 = vpop.f32.mrb[23].mxu0  ;;  %v982_v58 = vmul.f32 -1.442695, %v660_v52 }
 0xa5a   :  { %1078 = vtanh.f32 %v661_v54  ;;  %v983_v5 = vmul.f32 -1.442695, %v661_v54 }
 0xa5b   :  { %1080 = vpow2.f32 %v982_v58 }
 0xa64   :  { %v1079_v57 = vpop.eup %1078 }
 0xa65   :  { %677 = vrot.lane.b32.xlu0 %v1079_v57, %s1224_s1  ;;  %v1081_v59 = vpop.eup %1080 }
 0xa66   :  { %v668_v60 = vadd.f32 1.0, %v1081_v59 }
 0xa68   :  { %1082 = vrcp.f32 %v668_v60 }
 0xa72   :  { %v1083_v61 = vpop.eup %1082 }
 0xa73   :  { %v675_v30 = vmul.f32 %v1083_v61, %v606_v40 }
 0xad7   :  { %v678_v29 = vpop.permute.xlu0 %677 }
 0xad8   :  { %v680_v62 = vmul.f32 %v1083_v61, %v678_v29 }
 0xada   :  { %682 = vrot.lane.b32.xlu1 %v680_v62, %s1224_s1 }
 0xb4c   :  { %v683_v63 = vpop.permute.xlu1 %682 }
 0xb4d   :  { %v685_v1 = vadd.f32 %v683_v63, %v675_v30 }
 0xb4f   :  { %1084 = vtanh.f32 %v685_v1 }
 0xb50   :  { %1086 = vpow2.f32 %v983_v5  ;;  %v232_v5 = vadd.f32 %v1397_v38, %v1351_v24 }
 0xb59   :  { %v1085_v3 = vpop.eup %1084 }
 0xb5a   :  { %688 = vrot.lane.b32.xlu0 %v1085_v3, %s1224_s1  ;;  %v1087_v7 = vpop.eup %1086  ;;  %v230_v3 = vadd.f32 %v1395_v37, %v1349_v23 }
 0xb5b   :  { %v669_v9 = vadd.f32 1.0, %v1087_v7 }
 0xb5d   :  { %1088 = vrcp.f32 %v669_v9 }
 0xb67   :  { %v1089_v11 = vpop.eup %1088 }
 0xbcc   :  { %v689_v13 = vpop.permute.xlu0 %688 }
 0xbcd   :  { %v691_v15 = vmul.f32 %v1089_v11, %v689_v13 }
 0xbcf   :  { %v694_v17 = vpack.c.bf16 %v691_v15, %v691_v15 }
 0xbd1   :  { %984 = vmatmul.mubr.msk.bf16.vlgmr.msra.gmra.mrb[12].mxu1 %vm148_vm0, %v694_v17 }
 0xbd2   :  { %857 = vmatpush1.bf16.msra.mxu1 %v1302_v4  ;;  %888 = vmatprep.mubr.bf16.mxu1 %v1227_v0  ;;  %v222_v4 = vadd.f32 %v1389_v32, %v1351_v24 }
 0xbd3   :  { %858 = vmatprep.subr.bf16.mxu1 %v1306_v6 }
 0xbd6   :  { %859 = vmatpush1.bf16.msra.mxu1 %v1308_v8 }
 0xbd7   :  { %860 = vmatprep.subr.bf16.mxu1 %v1311_v10 }
 0xbda   :  { %861 = vmatpush1.bf16.msra.mxu1 %v1313_v12 }
 0xbdb   :  { %862 = vmatprep.subr.bf16.mxu1 %v1317_v14 }
 0xbde   :  { %863 = vmatpush1.bf16.msra.mxu1 %v1319_v16 }
 0xca4   :  { %v732_v19 = vpop.f32.mrb[12].mxu1 }
 0xca5   :  { %v739_v0 = vadd.f32 %v732_v19, %v220_v18  ;;  %v734_v20 = vpop.f32.mrb[13].mxu1 }
 0xca6   :  { %v740_v6 = vadd.f32 %v734_v20, %v222_v4  ;;  %v736_v21 = vpop.f32.mrb[14].mxu1 }
 0xca7   :  { %v737_v8 = vpop.f32.mrb[15].mxu1  ;;  %v985_v12 = vmul.f32 -1.442695, %v739_v0 }
 0xca8   :  { %1090 = vtanh.f32 %v740_v6  ;;  %v986_v27 = vmul.f32 -1.442695, %v740_v6 }
 0xca9   :  { %1092 = vpow2.f32 %v985_v12 }
 0xcb2   :  { %v1091_v10 = vpop.eup %1090 }
 0xcb3   :  { %756 = vrot.lane.b32.xlu1 %v1091_v10, %s1224_s1  ;;  %v1093_v14 = vpop.eup %1092 }
 0xcb4   :  { %v747_v16 = vadd.f32 1.0, %v1093_v14 }
 0xcb6   :  { %1094 = vrcp.f32 %v747_v16 }
 0xcc0   :  { %v1095_v22 = vpop.eup %1094 }
 0xcc1   :  { %v754_v32 = vmul.f32 %v1095_v22, %v685_v1 }
 0xd25   :  { %v757_v31 = vpop.permute.xlu1 %756 }
 0xd26   :  { %v759_v25 = vmul.f32 %v1095_v22, %v757_v31 }
 0xd28   :  { %761 = vrot.lane.b32.xlu0 %v759_v25, %s1224_s1 }
 0xd9a   :  { %v762_v26 = vpop.permute.xlu0 %761 }
 0xd9b   :  { %v764_v2 = vadd.f32 %v762_v26, %v754_v32 }
 0xd9d   :  { %1096 = vtanh.f32 %v764_v2 }
 0xd9e   :  { %1098 = vpow2.f32 %v986_v27 }
 0xda7   :  { %v1097_v33 = vpop.eup %1096 }
 0xda8   :  { %767 = vrot.lane.b32.xlu1 %v1097_v33, %s1224_s1  ;;  %v1099_v34 = vpop.eup %1098 }
 0xda9   :  { %v748_v28 = vadd.f32 1.0, %v1099_v34 }
 0xdab   :  { %1100 = vrcp.f32 %v748_v28 }
 0xdb5   :  { %v1101_v39 = vpop.eup %1100 }
 0xe1a   :  { %v768_v40 = vpop.permute.xlu1 %767 }
 0xe1b   :  { %v770_v41 = vmul.f32 %v1101_v39, %v768_v40 }
 0xe1d   :  { %v773_v42 = vpack.c.bf16 %v770_v41, %v770_v41 }
 0xe1f   :  { %987 = vmatmul.mubr.msk.bf16.vlgmr.msra.gmra.mrb[24].mxu0 %vm148_vm0, %v773_v42 }
 0xef2   :  { %v811_v45 = vpop.f32.mrb[24].mxu0 }
 0xef3   :  { %v818_v46 = vadd.f32 %v811_v45, %v226_v43  ;;  %v813_v47 = vpop.f32.mrb[25].mxu0 }
 0xef4   :  { %v819_v48 = vadd.f32 %v813_v47, %v228_v44  ;;  %v815_v49 = vpop.f32.mrb[26].mxu0 }
 0xef5   :  { %v816_v50 = vpop.f32.mrb[27].mxu0  ;;  %v988_v52 = vmul.f32 -1.442695, %v818_v46 }
 0xef6   :  { %1102 = vtanh.f32 %v819_v48  ;;  %v989_v60 = vmul.f32 -1.442695, %v819_v48 }
 0xef7   :  { %1104 = vpow2.f32 %v988_v52 }
 0xf00   :  { %v1103_v51 = vpop.eup %1102 }
 0xf01   :  { %835 = vrot.lane.b32.xlu0 %v1103_v51, %s1224_s1  ;;  %v1105_v53 = vpop.eup %1104 }
 0xf02   :  { %v826_v54 = vadd.f32 1.0, %v1105_v53 }
 0xf04   :  { %1106 = vrcp.f32 %v826_v54 }
 0xf0e   :  { %v1107_v55 = vpop.eup %1106 }
 0xf0f   :  { %v833_v36 = vmul.f32 %v1107_v55, %v764_v2 }
 0xf73   :  { %v836_v35 = vpop.permute.xlu0 %835 }
 0xf74   :  { %v838_v56 = vmul.f32 %v1107_v55, %v836_v35 }
 0xf76   :  { %840 = vrot.lane.b32.xlu1 %v838_v56, %s1224_s1 }
 0xfe8   :  { %v841_v57 = vpop.permute.xlu1 %840 }
 0xfe9   :  { %v843_v58 = vadd.f32 %v841_v57, %v833_v36 }
 0xfeb   :  { %1108 = vtanh.f32 %v843_v58 }
 0xfec   :  { %1110 = vpow2.f32 %v989_v60 }
 0xff5   :  { %v1109_v59 = vpop.eup %1108 }
 0xff6   :  { %846 = vrot.lane.b32.xlu0 %v1109_v59, %s1224_s1  ;;  %v1111_v61 = vpop.eup %1110 }
 0xff7   :  { %v827_v29 = vadd.f32 1.0, %v1111_v61 }
 0xff9   :  { %1112 = vrcp.f32 %v827_v29 }
0x1003   :  { %v1113_v62 = vpop.eup %1112 }
0x1068   :  { %v847_v30 = vpop.permute.xlu0 %846 }
0x1069   :  { %v849_v63 = vmul.f32 %v1113_v62, %v847_v30 }
0x106b   :  { %v852_v1 = vpack.c.bf16 %v849_v63, %v849_v63 }
0x106d   :  { %990 = vmatmul.mubr.msk.bf16.vlgmr.msra.gmra.mrb[16].mxu1 %vm148_vm0, %v852_v1 }
0x1140   :  { %v890_v7 = vpop.f32.mrb[16].mxu1 }
0x1141   :  { %v897_v9 = vadd.f32 %v890_v7, %v230_v3  ;;  %v892_v11 = vpop.f32.mrb[17].mxu1 }
0x1142   :  { %v898_v13 = vadd.f32 %v892_v11, %v232_v5  ;;  %v894_v15 = vpop.f32.mrb[18].mxu1 }
0x1143   :  { %v895_v17 = vpop.f32.mrb[19].mxu1  ;;  %v991_v4 = vmul.f32 -1.442695, %v897_v9 }
0x1144   :  { %1114 = vtanh.f32 %v898_v13  ;;  %v992_v8 = vmul.f32 -1.442695, %v898_v13 }
0x1145   :  { %1116 = vpow2.f32 %v991_v4 }
0x114e   :  { %v1115_v18 = vpop.eup %1114 }
0x114f   :  { %914 = vrot.lane.b32.xlu1 %v1115_v18, %s1224_s1  ;;  %v1117_v19 = vpop.eup %1116 }
0x1150   :  { %v905_v0 = vadd.f32 1.0, %v1117_v19 }
0x1152   :  { %1118 = vrcp.f32 %v905_v0 }
0x115c   :  { %v1119_v20 = vpop.eup %1118 }
0x115d   :  { %v912_v24 = vmul.f32 %v1119_v20, %v843_v58 }
0x11c1   :  { %v915_v23 = vpop.permute.xlu1 %914 }
0x11c2   :  { %v917_v37 = vmul.f32 %v1119_v20, %v915_v23 }
0x11c4   :  { %919 = vrot.lane.b32.xlu0 %v917_v37, %s1224_s1 }
0x1236   :  { %v920_v38 = vpop.permute.xlu0 %919 }
0x1237   :  { %v922_v6 = vadd.f32 %v920_v38, %v912_v24 }
0x1239   :  { %1120 = vtanh.f32 %v922_v6 }
0x123a   :  { %1122 = vpow2.f32 %v992_v8 }
0x1243   :  { %v1121_v21 = vpop.eup %1120 }
0x1244   :  { %925 = vrot.lane.b32.xlu1 %v1121_v21, %s1224_s1  ;;  %v1123_v10 = vpop.eup %1122 }
0x1245   :  { %v906_v12 = vadd.f32 1.0, %v1123_v10 }
0x1247   :  { %1124 = vrcp.f32 %v906_v12 }
0x1251   :  { %v1125_v14 = vpop.eup %1124 }
0x12b6   :  { %v926_v16 = vpop.permute.xlu1 %925 }
0x12b7   :  { %v928_v22 = vmul.f32 %v1125_v14, %v926_v16 }
0x12b9   :  { %929 = vst.msk [vmem:[#allocation9] sm:$0xff] %vm148_vm0, %v928_v22 }
0x12ba   :  { %1203 = shalt.err (!%p1200_p0)
}
0x12bb   :  { %s1204_s6 = scalar_lea.hbm %s1496_s4, 128 }
0x12bc   :  { %p1205_p1 = scmp.ne.s32.totalorder %s1496_s4, %s1204_s6  ;;  %p1208_p2 = scmp.lt.u32.totalorder %s1204_s6, %s1496_s4 }
0x12be   :  { %p1210_p3 = pnand %p1208_p2, %p1205_p1 }
0x12c0   :  { %1213 = shalt.err (!%p1210_p3)
}
0x12c1   :  { %939 = dma.vmem_to_hbm [thread:$0]  %s937_s26, 128, %s1496_s4, [#allocation5]  }
0x12c2   :  { %1218 = dma.done.wait [#allocation5], 128  }
0x12c3   :  { %1219 = vsyncadd [#allocation5], 4294967168 }
0x12c4   :  { %943 = vsyncpa [#allocation4], 1 }
0x12c5   :  { %944 = vsyncpa [#allocation7], 1 }
0x12c6   :  { %945 = vsyncpa [#allocation5], 1 }

</bundles_post_ra>
